<compile_context>
chip_gen: v7x
topology: tpu7x:2x2x1
jax: 0.10.0
libtpu: 0.0.40
codegen_flags: <defaults>
</compile_context>

<pallas_src>
import jax
import jax.numpy as jnp
from jax.experimental import pallas as pl
from jax.experimental.pallas import tpu as pltpu

_LANES = 128
_PER_STEP_BYTES = 12 << 20    # input block + f32 output block per grid step
_VMEM_LIMIT_BYTES = 32 << 20  # 2x double-buffered blocks (~24 MiB) + headroom
_MIN_GRID_STEPS = 4           # keep pipelining + megacore sharding alive


def _tofp32_kernel(x_ref, o_ref):
    # Elementwise cast on the VPU; whole tile at once.
    o_ref[...] = x_ref[...].astype(jnp.float32)


def _round_up(v, m):
    return ((v + m - 1) // m) * m


def tofp32(x, *, small_fallback_elems=1 << 18):
    """Cast any-dtype array to float32 using a Pallas TPU kernel.

    Flattens to a lane-dense (rows, lanes) slab, runs a tiled elementwise-cast
    kernel with large blocks, and restores the original shape.
    """
    # No-op: torch's .float() returns the same tensor when already float32.
    if x.dtype == jnp.float32:
        return x

    n = x.size
    # Tiny tensors and non-lane-aligned sizes: XLA's fused convert is already
    # at the HBM roofline and avoids the pad/slice round-trips a kernel needs.
    if n == 0 or n < small_fallback_elems or (n % _LANES) != 0:
        return x.astype(jnp.float32)

    orig_shape = x.shape
    itemsize = int(x.dtype.itemsize)
    # Sublane pack factor: 8 for >=32-bit, 16 for 16-bit, 32 for 8-bit dtypes.
    pack = 8 * max(1, 4 // max(itemsize, 1))

    # Widest lane-dense last dim that divides n (contiguous data -> reshape is
    # free; wider last dim = wider unmasked stores, fewer DMA descriptors).
    lanes = _LANES
    for cand in (1024, 512, 256):
        if n % cand == 0:
            lanes = cand
            break
    rows = n // lanes

    # Block sizing: byte budget (itemsize-aware), a >= MIN_GRID_STEPS split so
    # mid-size tensors still pipeline, and never bigger than the array itself.
    bytes_per_row = lanes * (itemsize + 4)  # input row + f32 output row
    budget_rows = max(pack, (_PER_STEP_BYTES // bytes_per_row) // pack * pack)
    split_rows = _round_up(-(-rows // _MIN_GRID_STEPS), pack)
    block_rows = max(pack, min(budget_rows, split_rows, _round_up(rows, pack)))
    if block_rows >= rows:
        # Single full block: full-extent dims are always a legal block shape.
        block_rows = rows
    grid = (pl.cdiv(rows, block_rows),)

    out2d = pl.pallas_call(
        _tofp32_kernel,
        out_shape=jax.ShapeDtypeStruct((rows, lanes), jnp.float32),
        grid_spec=pltpu.PrefetchScalarGridSpec(
            num_scalar_prefetch=0,
            grid=grid,
            in_specs=[pl.BlockSpec((block_rows, lanes), lambda i: (i, 0))],
            out_specs=pl.BlockSpec((block_rows, lanes), lambda i: (i, 0)),
        ),
        compiler_params=pltpu.CompilerParams(
            dimension_semantics=("parallel",),
            vmem_limit_bytes=_VMEM_LIMIT_BYTES,
        ),
        cost_estimate=pl.CostEstimate(
            flops=0, transcendentals=0, bytes_accessed=n * (itemsize + 4)
        ),
    )(x.reshape(rows, lanes))

    return out2d.reshape(orig_shape)


if __name__ == "__main__":
    key = jax.random.PRNGKey(0)

    # 1) Small NCHW input in bfloat16; force the kernel path (size below the
    #    default small-tensor fallback) to exercise the pallas_call.
    x = jax.random.normal(key, (2, 4, 16, 16), dtype=jnp.float32).astype(
        jnp.bfloat16
    )
    y = tofp32(x, small_fallback_elems=0)
    jax.block_until_ready(y)
    ref = x.astype(jnp.float32)
    assert y.dtype == jnp.float32
    assert y.shape == x.shape
    assert jnp.array_equal(y, ref), "mismatch vs reference cast (small forced)"

    # 2) Medium bf16 tensor: takes the default kernel path with a multi-step,
    #    megacore-parallel grid.
    xm = jax.random.normal(key, (2, 64, 64, 64), dtype=jnp.float32).astype(
        jnp.bfloat16
    )
    ym = tofp32(xm)
    jax.block_until_ready(ym)
    refm = xm.astype(jnp.float32)
    assert ym.dtype == jnp.float32
    assert ym.shape == xm.shape
    assert jnp.array_equal(ym, refm), "mismatch vs reference cast (medium)"

    # 3) Non-lane-aligned size: uses the XLA-convert fallback (no pad/slice).
    x2 = jax.random.normal(key, (3, 5, 7, 11), dtype=jnp.float32).astype(
        jnp.bfloat16
    )
    y2 = tofp32(x2)
    jax.block_until_ready(y2)
    ref2 = x2.astype(jnp.float32)
    assert y2.dtype == jnp.float32
    assert y2.shape == x2.shape
    assert jnp.array_equal(y2, ref2), "mismatch vs reference cast (ragged)"

    # 4) Already-float32 input: early return, no kernel launch.
    x3 = jax.random.normal(key, (2, 4, 16, 16), dtype=jnp.float32)
    y3 = tofp32(x3)
    assert y3.dtype == jnp.float32
    assert jnp.array_equal(y3, x3)

    print("KERNEL_OK")
</pallas_src>

<mosaic_0001>
module attributes {stable_mosaic.version = 11 : i64} {
  func.func @_tofp32_kernel(%arg0: i32, %arg1: memref<2x1024xbf16, #tpu.memory_space<vmem>>, %arg2: memref<2x1024xf32, #tpu.memory_space<vmem>>) attributes {dimension_semantics = [#tpu.dimension_semantics<parallel>], iteration_bounds = array<i64: 1>, scalar_prefetch = 0 : i64, scratch_operands = 0 : i64, tpu.core_type = #tpu.core_type<tc>, window_params = [{transform_indices = @transform_0, window_bounds = array<i64: 2, 1024>}, {transform_indices = @transform_1, window_bounds = array<i64: 2, 1024>}]} {
    %c0 = arith.constant 0 : index
    %c0_0 = arith.constant 0 : index
    %0 = vector.load %arg1[%c0, %c0_0] : memref<2x1024xbf16, #tpu.memory_space<vmem>>, vector<2x1024xbf16>
    %1 = arith.extf %0 : vector<2x1024xbf16> to vector<2x1024xf32>
    %c0_1 = arith.constant 0 : index
    %c0_2 = arith.constant 0 : index
    %2 = vector.load %arg2[%c0_1, %c0_2] : memref<2x1024xf32, #tpu.memory_space<vmem>>, vector<2x1024xf32>
    tpu.vector_store %arg2[%c0_1, %c0_2], %1 {strides = array<i32>} : memref<2x1024xf32, #tpu.memory_space<vmem>>, vector<2x1024xf32>,
    return
  }
  func.func @transform_0(%arg0: i32) -> (i32, i32) {
    %c0_i32 = arith.constant 0 : i32
    %c0_i32_0 = arith.constant 0 : i32
    return %arg0, %c0_i32 : i32, i32
  }
  func.func @transform_1(%arg0: i32) -> (i32, i32) {
    %c0_i32 = arith.constant 0 : i32
    %c0_i32_0 = arith.constant 0 : i32
    return %arg0, %c0_i32 : i32, i32
  }
}

</mosaic_0001>

<bundles_post_ra>
// kernel: tpu_custom_call.1
= control target key start
LH: loop header
LB: loop body
LE: loop exit
PB: predicated region body
PF: predicated region fallthrough
CT: control target
= control target key end

     0   :  { %6 = vsyncpa [#allocation3], 0  ;;  %s127_s0 = inlined_call_operand.hbm [shape: bf16[2,1024], index: 0, kind: input, shape index: {}]   ;;  %s128_s1 = inlined_call_operand.hbm [shape: f32[2,1024], index: 1, kind: output, shape index: {}]  }
   0x1   :  { %7 = vsyncpa [#allocation4], 0  ;;  %s91_s6 = smov [#allocation2]   ;;  %s43_s10 = scalar_lea.hbm %s127_s0, 128 }
   0x2   :  { %s14_s7 = sshll.u32 %s91_s6, 4  ;;  %p44_p0 = scmp.ne.s32.totalorder %s127_s0, %s43_s10  ;;  %s15_s7 = int_to_ptr.vmem [resolvable:$true] %s14_s7 }
   0x3   :  { %p47_p1 = scmp.lt.u32.totalorder %s43_s10, %s127_s0 }
   0x5   :  { %p49_p2 = pnand %p47_p1, %p44_p0 }
   0x7   :  { %52 = shalt.err (!%p49_p2)
}
   0x8   :  { %s53_s15 = scalar_lea.vmem %s15_s7, 128  ;;  %p58_p4 = scmp.lt.s32.totalorder %s15_s7, %s15_s7 }
   0x9   :  { %p54_p3 = scmp.ne.s32.totalorder %s15_s7, %s53_s15  ;;  %p59_p5 = scmp.lt.s32.totalorder %s53_s15, %s53_s15 }
   0xb   :  { %p60_p6 = por %p59_p5, %p58_p4 }
   0xd   :  { %p61_p7 = pnand %p60_p6, %p54_p3 }
   0xf   :  { %64 = shalt.err (!%p61_p7)
}
  0x10   :  { %17 = dma.hbm_to_vmem [thread:$0]  %s127_s0, 128, %s15_s7, [#allocation3]  }
  0x11   :  { %87 = dma.done.wait [#allocation3], 128  }
  0x12   :  { %88 = vsyncadd [#allocation3], 4294967168  ;;  %s92_s18 = smov [#allocation5]   ;;  %v21_v0 = vld [vmem:[#allocation2] sm:$0xff] }
  0x13   :  { %s32_s19 = sshll.u32 %s92_s18, 4  ;;  %v22_v1 = vunpack.c.l.bf16 %v21_v0  ;;  %v23_v2 = vunpack.c.h.bf16 %v21_v0  ;;  %s33_s19 = int_to_ptr.vmem [resolvable:$true] %s32_s19 }
  0x14   :  { %s65_s20 = scalar_lea.vmem %s33_s19, 256  ;;  %p70_p9 = scmp.lt.s32.totalorder %s33_s19, %s33_s19 }
  0x15   :  { %24 = vst [vmem:[#allocation5] sm:$0xff] %v22_v1  ;;  %25 = vst [vmem:[#allocation5 + $0x8] sm:$0xff] %v23_v2  ;;  %p66_p8 = scmp.ne.s32.totalorder %s33_s19, %s65_s20  ;;  %p71_p10 = scmp.lt.s32.totalorder %s65_s20, %s65_s20 }
  0x17   :  { %p72_p11 = por %p71_p10, %p70_p9 }
  0x19   :  { %p73_p12 = pnand %p72_p11, %p66_p8 }
  0x1b   :  { %76 = shalt.err (!%p73_p12)
}
  0x1c   :  { %s77_s0 = scalar_lea.hbm %s128_s1, 256 }
  0x1d   :  { %p78_p13 = scmp.ne.s32.totalorder %s128_s1, %s77_s0  ;;  %p81_p0 = scmp.lt.u32.totalorder %s77_s0, %s128_s1 }
  0x1f   :  { %p83_p1 = pnand %p81_p0, %p78_p13 }
  0x21   :  { %86 = shalt.err (!%p83_p1)
}
  0x22   :  { %35 = dma.vmem_to_hbm [thread:$0]  %s33_s19, 256, %s128_s1, [#allocation4]  }
  0x23   :  { %89 = dma.done.wait [#allocation4], 256  }
  0x24   :  { %90 = vsyncadd [#allocation4], 4294967040 }
  0x25   :  { %39 = vsyncpa [#allocation3], 1 }
  0x26   :  { %40 = vsyncpa [#allocation4], 1 }

</bundles_post_ra>
